<compile_context>
chip_gen: v7x
topology: tpu7x:2x2x1
jax: 0.10.0
libtpu: 0.0.40
codegen_flags: <defaults>
</compile_context>

<pallas_src>
import functools

import jax
import jax.numpy as jnp
import numpy as np
from jax.experimental import pallas as pl
from jax.experimental.pallas import tpu as pltpu


# ----------------------------------------------------------------------------
# Mask construction (identical semantics to the PyTorch get_mask).
# ----------------------------------------------------------------------------
def get_mask(in_features, out_features, in_flow_features, mask_type=None):
    if mask_type == 'input':
        in_degrees = np.arange(in_features) % in_flow_features
    else:
        in_degrees = np.arange(in_features) % (in_flow_features - 1)
    if mask_type == 'output':
        out_degrees = np.arange(out_features) % in_flow_features - 1
    else:
        out_degrees = np.arange(out_features) % (in_flow_features - 1)
    # (out_features, in_features), matching nn.Linear weight layout
    return (out_degrees[:, None] >= in_degrees[None, :]).astype(np.float32)


# ----------------------------------------------------------------------------
# Small capability / hardware probes.
# ----------------------------------------------------------------------------
def _vmem_capacity_bytes():
    try:
        info = pltpu.get_tpu_info()
        cap = getattr(info, "vmem_capacity_bytes", None)
        if cap:
            return int(cap)
    except Exception:
        pass
    return 64 * 1024 * 1024      # v7x-safe fallback (v5e/v6e have more)


def _probe_copy_kernel(x_ref, o_ref):
    o_ref[...] = x_ref[...]


_SINGLE_BUFFER_OK = None


def _single_buffer_weights_supported():
    """One-time probe: can resident inputs use pipeline_mode=pl.Buffered(1)?"""
    global _SINGLE_BUFFER_OK
    if _SINGLE_BUFFER_OK is None:
        try:
            x = jnp.arange(8 * 128, dtype=jnp.float32).reshape(8, 128)
            out = pl.pallas_call(
                _probe_copy_kernel,
                grid=(1,),
                in_specs=[pl.BlockSpec((8, 128), lambda i: (0, 0),
                                       pipeline_mode=pl.Buffered(1))],
                out_specs=pl.BlockSpec((8, 128), lambda i: (0, 0)),
                out_shape=jax.ShapeDtypeStruct((8, 128), jnp.float32),
            )(x)
            jax.block_until_ready(out)
            _SINGLE_BUFFER_OK = bool(np.allclose(np.asarray(out), np.asarray(x)))
        except Exception:
            _SINGLE_BUFFER_OK = False
    return _SINGLE_BUFFER_OK


# ----------------------------------------------------------------------------
# Pallas kernel.  Transposed (batch-on-lanes), 8-aligned layout:
#   xz_ref : (Kin_pad, TB)      param_dtype  streamed [x ; 0-pad ; cond]^T tile
#   w1_ref : (H, Kin_pad)       param_dtype  pre-masked, cond-fused layer-1 W
#   w2_ref : (H, H)             param_dtype  pre-masked hidden W
#   w3_ref : (2*D_pad+1, H)     param_dtype  [m|a|logdet-row] weights (8-aligned)
#   b*_ref : (.., 1)            f32          column biases (lane-broadcast)
#   out_ref: (D_pad+1, TB)      f32          merged [u rows ; logdet row] tile
# ----------------------------------------------------------------------------
def _made_kernel(xz_ref, w1_ref, b1_ref, w2_ref, b2_ref, w3_ref, b3_ref,
                 out_ref, *, d_pad, mxu_dtype):
    xz = xz_ref[...]                                                # (Kin_pad, TB)

    # Layer 1 (joiner, cond fused): param-dtype MXU matmul, f32 accumulation.
    h = jnp.dot(w1_ref[...], xz, preferred_element_type=jnp.float32) + b1_ref[...]
    h = jnp.maximum(h, 0.0).astype(mxu_dtype)        # keep the MXU in bf16
    # Layer 2.
    h = jnp.dot(w2_ref[...], h, preferred_element_type=jnp.float32) + b2_ref[...]
    h = jnp.maximum(h, 0.0).astype(mxu_dtype)
    # Layer 3 + fused logdet row.
    out = jnp.dot(w3_ref[...], h, preferred_element_type=jnp.float32) + b3_ref[...]

    m = out[:d_pad, :]                 # 8-aligned slice (free view)
    a = out[d_pad:2 * d_pad, :]        # 8-aligned slice (free view)
    x = xz[:d_pad, :].astype(jnp.float32)
    out_ref[:d_pad, :] = (x - m) * jnp.exp(-a)       # u rows   (lane-dense store)
    out_ref[d_pad:, :] = out[2 * d_pad:, :]          # logdet row == -sum(a)


# ----------------------------------------------------------------------------
# MADE module (parameter setup in plain JAX, hot path in Pallas).
# ----------------------------------------------------------------------------
class MadePallas:
    def __init__(self, num_inputs, num_hidden, num_cond_inputs=None,
                 key=None, param_dtype=jnp.bfloat16):
        if key is None:
            key = jax.random.PRNGKey(0)
        self.num_inputs = num_inputs
        self.num_hidden = num_hidden
        self.num_cond_inputs = num_cond_inputs
        self.param_dtype = param_dtype
        self.d_pad = -(-num_inputs // 8) * 8            # 8-aligned feature rows

        D, H, D_pad = num_inputs, num_hidden, self.d_pad

        m_in = get_mask(D, H, D, mask_type='input')
        m_hid = get_mask(H, H, D)
        m_out = get_mask(H, D * 2, D, mask_type='output')

        def linear_init(k, fan_in, fan_out):
            # nn.Linear default: U(-1/sqrt(fan_in), 1/sqrt(fan_in))
            kw, kb = jax.random.split(k)
            bound = 1.0 / np.sqrt(fan_in)
            w = jax.random.uniform(kw, (fan_out, fan_in), jnp.float32, -bound, bound)
            b = jax.random.uniform(kb, (fan_out,), jnp.float32, -bound, bound)
            return w, b

        keys = jax.random.split(key, 4)
        self.w1, self.b1 = linear_init(keys[0], D, H)
        self.w2, self.b2 = linear_init(keys[1], H, H)
        self.w3, self.b3 = linear_init(keys[2], H, D * 2)
        self.m1, self.m2, self.m3 = (jnp.asarray(m) for m in (m_in, m_hid, m_out))
        if num_cond_inputs is not None:
            bound = 1.0 / np.sqrt(num_cond_inputs)
            self.wc = jax.random.uniform(
                keys[3], (H, num_cond_inputs), jnp.float32, -bound, bound)
        else:
            self.wc = None

        # --- kernel-ready parameters -------------------------------------
        # Layer 1: pre-masked W1 with zero columns for the padded x rows, and
        # the conditional weights fused on so layer 1 is a single matmul.
        w1m = self.w1 * self.m1                                    # (H, D)
        w1x = jnp.pad(w1m, ((0, 0), (0, D_pad - D)))               # (H, D_pad)
        if self.wc is not None:
            w1f = jnp.concatenate([w1x, self.wc], axis=1)          # (H, D_pad + C)
        else:
            w1f = w1x
        self.w1f = w1f.astype(param_dtype)
        self.kin_pad = self.w1f.shape[1]
        self.w2m = (self.w2 * self.m2).astype(param_dtype)         # (H, H)

        # Layer 3, 8-aligned row groups: [m rows | pad | a rows | pad | logdet].
        # Stored in param_dtype; the logdet row is built from the *quantized*
        # a-rows so it stays consistent with -sum(a) at weight precision.
        w3m_q = (self.w3 * self.m3).astype(param_dtype)            # (2D, H)
        w3_m_rows = jnp.pad(w3m_q[:D], ((0, D_pad - D), (0, 0)))
        w3_a_rows = jnp.pad(w3m_q[D:], ((0, D_pad - D), (0, 0)))
        ld_row = (-jnp.sum(w3m_q[D:].astype(jnp.float32), axis=0, keepdims=True)
                  ).astype(param_dtype)
        self.w3aug = jnp.concatenate([w3_m_rows, w3_a_rows, ld_row], axis=0)

        b3_m = jnp.pad(self.b3[:D], (0, D_pad - D))
        b3_a = jnp.pad(self.b3[D:], (0, D_pad - D))
        b3_ld = -jnp.sum(self.b3[D:])
        self.b3aug = jnp.concatenate([b3_m, b3_a, b3_ld[None]])[:, None]   # f32
        self.b1c = self.b1[:, None]
        self.b2c = self.b2[:, None]

        item = jnp.dtype(param_dtype).itemsize
        self.resident_bytes = int(
            (self.w1f.size + self.w2m.size + self.w3aug.size) * item
            + (self.b1c.size + self.b2c.size + self.b3aug.size) * 4)

    # ------------------------------------------------------------------
    def __call__(self, inputs, cond_inputs=None, mode='direct',
                 transposed_outputs=False):
        # TODO(synk): 'inverse' (sequential sampling) mode not implemented.
        assert mode == 'direct'
        B, D = inputs.shape
        assert D == self.num_inputs
        if self.num_cond_inputs is None:
            assert cond_inputs is None
        else:
            assert cond_inputs is not None
            assert cond_inputs.shape == (B, self.num_cond_inputs)

        D_pad, H, Kin_pad = self.d_pad, self.num_hidden, self.kin_pad
        item = jnp.dtype(self.param_dtype).itemsize

        # --- batch tiling --------------------------------------------------
        LANE = 128
        B_pad = -(-B // LANE) * LANE          # pad batch only to a 128 multiple
        k = B_pad // LANE

        single_buf = _single_buffer_weights_supported()
        res_mult = 1 if single_buf else 2
        vmem_cap = _vmem_capacity_bytes()
        budget = int(vmem_cap * 0.70)

        stream_per_col = 2 * (Kin_pad * item + (D_pad + 1) * 4)     # 2x-buffered I/O
        temp_per_col = (2 * H + 2 * (2 * D_pad + 1) + Kin_pad + D_pad) * 4  # f32 temps
        headroom = 4 << 20
        avail = max(0, budget - self.resident_bytes * res_mult - headroom)
        tb_cap = max(LANE, min(4096,
                               (avail // max(1, stream_per_col + temp_per_col))
                               // LANE * LANE))

        # TB must be a divisor of B_pad (no padding beyond 128) and we prefer
        # >= 2 grid steps so the batch axis can shard across v7x's two cores.
        d_cap = max(1, tb_cap // LANE)
        divs = [d for d in range(1, k + 1) if k % d == 0 and d <= d_cap]
        pref = [d for d in divs if k // d >= 2]
        d_sel = max(pref) if pref else max(divs)
        TB = d_sel * LANE
        n_tiles = k // d_sel

        needed = (self.resident_bytes * res_mult
                  + (stream_per_col + temp_per_col) * TB + headroom)
        vmem_limit = int(min(vmem_cap * 0.85, max(needed, 16 << 20)))

        # --- layout plumbing: one fused transpose+pad+cast pass -------------
        parts = [inputs.T.astype(jnp.float32)]
        if D_pad > D:
            parts.append(jnp.zeros((D_pad - D, B), jnp.float32))
        if cond_inputs is not None:
            parts.append(cond_inputs.T.astype(jnp.float32))
        z_rows = parts[0] if len(parts) == 1 else jnp.concatenate(parts, axis=0)
        zt = jnp.pad(z_rows, ((0, 0), (0, B_pad - B))).astype(self.param_dtype)

        flops = 2 * B_pad * (Kin_pad * H + H * H + H * (2 * D_pad + 1))
        bytes_accessed = (B_pad * Kin_pad * item
                          + B_pad * (D_pad + 1) * 4
                          + self.resident_bytes)
        cost = pl.CostEstimate(flops=int(flops),
                               transcendentals=int(B_pad * D_pad),
                               bytes_accessed=int(bytes_accessed))

        kernel = functools.partial(_made_kernel, d_pad=D_pad,
                                   mxu_dtype=self.param_dtype)

        def resident(shape):
            if single_buf:
                return pl.BlockSpec(shape, lambda i: (0, 0),
                                    pipeline_mode=pl.Buffered(1))
            return pl.BlockSpec(shape, lambda i: (0, 0))

        out_full = pl.pallas_call(
            kernel,
            grid=(n_tiles,),
            in_specs=[
                pl.BlockSpec((Kin_pad, TB), lambda i: (0, i)),
                resident(self.w1f.shape),
                resident(self.b1c.shape),
                resident(self.w2m.shape),
                resident(self.b2c.shape),
                resident(self.w3aug.shape),
                resident(self.b3aug.shape),
            ],
            out_specs=pl.BlockSpec((D_pad + 1, TB), lambda i: (0, i)),
            out_shape=jax.ShapeDtypeStruct((D_pad + 1, B_pad), jnp.float32),
            compiler_params=pltpu.CompilerParams(
                dimension_semantics=("parallel",),      # megacore on v7x
                vmem_limit_bytes=vmem_limit,
            ),
            cost_estimate=cost,
        )(zt, self.w1f, self.b1c, self.w2m, self.b2c, self.w3aug, self.b3aug)

        if transposed_outputs:
            return out_full[:D, :B], out_full[D_pad:D_pad + 1, :B]
        out_bt = out_full[:, :B].T            # single transpose/slice pass
        u = out_bt[:, :D]                     # (B, D)
        logdet = out_bt[:, D_pad:D_pad + 1]   # (B, 1)
        return u, logdet

    # ------------------------------------------------------------------
    # Pure-JAX reference mirroring the kernel math (same dtype quantization).
    def reference(self, inputs, cond_inputs=None):
        D, D_pad = self.num_inputs, self.d_pad
        B = inputs.shape[0]
        parts = [inputs]
        if D_pad > D:
            parts.append(jnp.zeros((B, D_pad - D), inputs.dtype))
        if cond_inputs is not None:
            parts.append(cond_inputs)
        z = parts[0] if len(parts) == 1 else jnp.concatenate(parts, axis=1)
        zq = z.astype(self.param_dtype).astype(jnp.float32)
        w1 = self.w1f.astype(jnp.float32)
        w2 = self.w2m.astype(jnp.float32)
        w3 = self.w3aug.astype(jnp.float32)
        h = jnp.maximum(zq @ w1.T + self.b1, 0.0)
        h = h.astype(self.param_dtype).astype(jnp.float32)
        h = jnp.maximum(h @ w2.T + self.b2, 0.0)
        h = h.astype(self.param_dtype).astype(jnp.float32)
        out = h @ w3.T + self.b3aug[:, 0]
        m, a = out[:, :D_pad], out[:, D_pad:2 * D_pad]
        u = (zq[:, :D_pad] - m) * jnp.exp(-a)
        return u[:, :D], out[:, 2 * D_pad:]

    # Exact f32 PyTorch-semantics reference (unfused, unaugmented params).
    def reference_f32(self, inputs, cond_inputs=None):
        h = inputs @ (self.w1 * self.m1).T + self.b1
        if cond_inputs is not None:
            h = h + cond_inputs @ self.wc.T
        h = jnp.maximum(h, 0.0)
        h = jnp.maximum(h @ (self.w2 * self.m2).T + self.b2, 0.0)
        out = h @ (self.w3 * self.m3).T + self.b3
        m, a = out[:, :self.num_inputs], out[:, self.num_inputs:]
        return (inputs - m) * jnp.exp(-a), -a.sum(-1, keepdims=True)


if __name__ == "__main__":
    key = jax.random.PRNGKey(0)
    k_model, k_x, k_c, k_m2, k_x2, k_c2 = jax.random.split(key, 6)

    # Primary small shapes: D=8, H=32, C=4, batch=2.
    D, H, C, B = 8, 32, 4, 2
    x = jax.random.normal(k_x, (B, D), jnp.float32)
    cond = jax.random.normal(k_c, (B, C), jnp.float32)

    # bf16-streamed default, conditional path.
    model = MadePallas(D, H, num_cond_inputs=C, key=k_model)
    u, ld = model(x, cond)
    jax.block_until_ready((u, ld))
    u_r, ld_r = model.reference(x, cond)
    assert u.shape == (B, D) and ld.shape == (B, 1)
    assert np.allclose(np.asarray(u), np.asarray(u_r), atol=3e-3, rtol=3e-3)
    assert np.allclose(np.asarray(ld), np.asarray(ld_r), atol=3e-3, rtol=3e-3)

    # Unconditional path.
    model_nc = MadePallas(D, H, num_cond_inputs=None, key=k_model)
    u2, ld2 = model_nc(x)
    jax.block_until_ready((u2, ld2))
    u2_r, ld2_r = model_nc.reference(x)
    assert np.allclose(np.asarray(u2), np.asarray(u2_r), atol=3e-3, rtol=3e-3)
    assert np.allclose(np.asarray(ld2), np.asarray(ld2_r), atol=3e-3, rtol=3e-3)

    # Multi-tile batch (exercises batch-tiled grid / megacore sharding path).
    xb = jax.random.normal(k_x2, (300, D), jnp.float32)
    u3, ld3 = model_nc(xb)
    jax.block_until_ready((u3, ld3))
    u3_r, ld3_r = model_nc.reference(xb)
    assert np.allclose(np.asarray(u3), np.asarray(u3_r), atol=3e-3, rtol=3e-3)
    assert np.allclose(np.asarray(ld3), np.asarray(ld3_r), atol=3e-3, rtol=3e-3)

    # Non-multiple-of-8 feature count exercises the sublane-aligned padding.
    model_p = MadePallas(6, 24, num_cond_inputs=3, key=k_m2)
    xp = jax.random.normal(k_x2, (5, 6), jnp.float32)
    cp = jax.random.normal(k_c2, (5, 3), jnp.float32)
    u4, ld4 = model_p(xp, cp)
    jax.block_until_ready((u4, ld4))
    u4_r, ld4_r = model_p.reference(xp, cp)
    assert np.allclose(np.asarray(u4), np.asarray(u4_r), atol=3e-3, rtol=3e-3)
    assert np.allclose(np.asarray(ld4), np.asarray(ld4_r), atol=3e-3, rtol=3e-3)

    # Full-f32 precision mode: matches the exact PyTorch-style f32 math.
    model_f32 = MadePallas(D, H, num_cond_inputs=C, key=k_model,
                           param_dtype=jnp.float32)
    u5, ld5 = model_f32(x, cond)
    jax.block_until_ready((u5, ld5))
    u5_r, ld5_r = model_f32.reference_f32(x, cond)
    assert np.allclose(np.asarray(u5), np.asarray(u5_r), atol=1e-4, rtol=1e-4)
    assert np.allclose(np.asarray(ld5), np.asarray(ld5_r), atol=1e-4, rtol=1e-4)

    print("KERNEL_OK")
</pallas_src>

<mosaic_0001>
module attributes {stable_mosaic.version = 11 : i64} {
  func.func @_probe_copy_kernel(%arg0: i32, %arg1: memref<8x128xf32, #tpu.memory_space<vmem>>, %arg2: memref<8x128xf32, #tpu.memory_space<vmem>>) attributes {dimension_semantics = [#tpu.dimension_semantics<arbitrary>], iteration_bounds = array<i64: 1>, scalar_prefetch = 0 : i64, scratch_operands = 0 : i64, tpu.core_type = #tpu.core_type<tc>, window_params = [{pipeline_mode = #tpu.pipeline_mode<synchronous>, transform_indices = @transform_0, window_bounds = array<i64: 8, 128>}, {pipeline_mode = #tpu.pipeline_mode<synchronous>, transform_indices = @transform_1, window_bounds = array<i64: 8, 128>}]} {
    %c0 = arith.constant 0 : index
    %c0_0 = arith.constant 0 : index
    %0 = vector.load %arg1[%c0, %c0_0] : memref<8x128xf32, #tpu.memory_space<vmem>>, vector<8x128xf32>
    %c0_1 = arith.constant 0 : index
    %c0_2 = arith.constant 0 : index
    %1 = vector.load %arg2[%c0_1, %c0_2] : memref<8x128xf32, #tpu.memory_space<vmem>>, vector<8x128xf32>
    tpu.vector_store %arg2[%c0_1, %c0_2], %0 {strides = array<i32>} : memref<8x128xf32, #tpu.memory_space<vmem>>, vector<8x128xf32>,
    return
  }
  func.func @transform_0(%arg0: i32) -> (i32, i32) {
    %c0_i32 = arith.constant 0 : i32
    %c0_i32_0 = arith.constant 0 : i32
    %c0_i32_1 = arith.constant 0 : i32
    return %c0_i32, %c0_i32_0 : i32, i32
  }
  func.func @transform_1(%arg0: i32) -> (i32, i32) {
    %c0_i32 = arith.constant 0 : i32
    %c0_i32_0 = arith.constant 0 : i32
    %c0_i32_1 = arith.constant 0 : i32
    return %c0_i32, %c0_i32_0 : i32, i32
  }
}

module attributes {stable_mosaic.version = 11 : i64} {
  func.func @_made_kernel(%arg0: i32, %arg1: memref<12x128xbf16, #tpu.memory_space<vmem>>, %arg2: memref<32x12xbf16, #tpu.memory_space<vmem>>, %arg3: memref<32x1xf32, #tpu.memory_space<vmem>>, %arg4: memref<32x32xbf16, #tpu.memory_space<vmem>>, %arg5: memref<32x1xf32, #tpu.memory_space<vmem>>, %arg6: memref<17x32xbf16, #tpu.memory_space<vmem>>, %arg7: memref<17x1xf32, #tpu.memory_space<vmem>>, %arg8: memref<9x128xf32, #tpu.memory_space<vmem>>) attributes {dimension_semantics = [#tpu.dimension_semantics<parallel>], iteration_bounds = array<i64: 1>, scalar_prefetch = 0 : i64, scratch_operands = 0 : i64, tpu.core_type = #tpu.core_type<tc>, window_params = [{transform_indices = @transform_0, window_bounds = array<i64: 12, 128>}, {pipeline_mode = #tpu.pipeline_mode<synchronous>, transform_indices = @transform_1, window_bounds = array<i64: 32, 12>}, {pipeline_mode = #tpu.pipeline_mode<synchronous>, transform_indices = @transform_2, window_bounds = array<i64: 32, 1>}, {pipeline_mode = #tpu.pipeline_mode<synchronous>, transform_indices = @transform_3, window_bounds = array<i64: 32, 32>}, {pipeline_mode = #tpu.pipeline_mode<synchronous>, transform_indices = @transform_4, window_bounds = array<i64: 32, 1>}, {pipeline_mode = #tpu.pipeline_mode<synchronous>, transform_indices = @transform_5, window_bounds = array<i64: 17, 32>}, {pipeline_mode = #tpu.pipeline_mode<synchronous>, transform_indices = @transform_6, window_bounds = array<i64: 17, 1>}, {transform_indices = @transform_7, window_bounds = array<i64: 9, 128>}]} {
    %c0 = arith.constant 0 : index
    %c0_0 = arith.constant 0 : index
    %0 = vector.load %arg1[%c0, %c0_0] : memref<12x128xbf16, #tpu.memory_space<vmem>>, vector<12x128xbf16>
    %c0_1 = arith.constant 0 : index
    %c0_2 = arith.constant 0 : index
    %1 = vector.load %arg2[%c0_1, %c0_2] : memref<32x12xbf16, #tpu.memory_space<vmem>>, vector<32x12xbf16>
    %cst = arith.constant dense<0.000000e+00> : vector<32x128xf32>
    %2 = tpu.matmul %1, %0, %cst {dimension_numbers = #tpu.dot_dimension_numbers<[1], [0], [0], [1], [0, 0, 1, 1], [], []>} : vector<32x12xbf16>, vector<12x128xbf16>, vector<32x128xf32> -> vector<32x128xf32>
    %c0_3 = arith.constant 0 : index
    %c0_4 = arith.constant 0 : index
    %3 = vector.load %arg3[%c0_3, %c0_4] : memref<32x1xf32, #tpu.memory_space<vmem>>, vector<32x1xf32>
    %4 = vector.broadcast %3 : vector<32x1xf32> to vector<32x128xf32>
    %5 = arith.addf %2, %4 : vector<32x128xf32>
    %cst_5 = arith.constant 0.000000e+00 : f32
    %6 = vector.broadcast %cst_5 : f32 to vector<32x128xf32>
    %7 = arith.maximumf %5, %6 : vector<32x128xf32>
    %8 = arith.truncf %7 : vector<32x128xf32> to vector<32x128xbf16>
    %c0_6 = arith.constant 0 : index
    %c0_7 = arith.constant 0 : index
    %9 = vector.load %arg4[%c0_6, %c0_7] : memref<32x32xbf16, #tpu.memory_space<vmem>>, vector<32x32xbf16>
    %cst_8 = arith.constant dense<0.000000e+00> : vector<32x128xf32>
    %10 = tpu.matmul %9, %8, %cst_8 {dimension_numbers = #tpu.dot_dimension_numbers<[1], [0], [0], [1], [0, 0, 1, 1], [], []>} : vector<32x32xbf16>, vector<32x128xbf16>, vector<32x128xf32> -> vector<32x128xf32>
    %c0_9 = arith.constant 0 : index
    %c0_10 = arith.constant 0 : index
    %11 = vector.load %arg5[%c0_9, %c0_10] : memref<32x1xf32, #tpu.memory_space<vmem>>, vector<32x1xf32>
    %12 = vector.broadcast %11 : vector<32x1xf32> to vector<32x128xf32>
    %13 = arith.addf %10, %12 : vector<32x128xf32>
    %cst_11 = arith.constant 0.000000e+00 : f32
    %14 = vector.broadcast %cst_11 : f32 to vector<32x128xf32>
    %15 = arith.maximumf %13, %14 : vector<32x128xf32>
    %16 = arith.truncf %15 : vector<32x128xf32> to vector<32x128xbf16>
    %c0_12 = arith.constant 0 : index
    %c0_13 = arith.constant 0 : index
    %17 = vector.load %arg6[%c0_12, %c0_13] : memref<17x32xbf16, #tpu.memory_space<vmem>>, vector<17x32xbf16>
    %cst_14 = arith.constant dense<0.000000e+00> : vector<17x128xf32>
    %18 = tpu.matmul %17, %16, %cst_14 {dimension_numbers = #tpu.dot_dimension_numbers<[1], [0], [0], [1], [0, 0, 1, 1], [], []>} : vector<17x32xbf16>, vector<32x128xbf16>, vector<17x128xf32> -> vector<17x128xf32>
    %c0_15 = arith.constant 0 : index
    %c0_16 = arith.constant 0 : index
    %19 = vector.load %arg7[%c0_15, %c0_16] : memref<17x1xf32, #tpu.memory_space<vmem>>, vector<17x1xf32>
    %20 = vector.broadcast %19 : vector<17x1xf32> to vector<17x128xf32>
    %21 = arith.addf %18, %20 : vector<17x128xf32>
    %22 = vector.extract_strided_slice %21 {offsets = [0, 0], sizes = [8, 128], strides = [1, 1]} : vector<17x128xf32> to vector<8x128xf32>
    %23 = vector.extract_strided_slice %21 {offsets = [8, 0], sizes = [8, 128], strides = [1, 1]} : vector<17x128xf32> to vector<8x128xf32>
    %24 = vector.extract_strided_slice %0 {offsets = [0, 0], sizes = [8, 128], strides = [1, 1]} : vector<12x128xbf16> to vector<8x128xbf16>
    %25 = arith.extf %24 : vector<8x128xbf16> to vector<8x128xf32>
    %26 = arith.subf %25, %22 : vector<8x128xf32>
    %cst_17 = arith.constant 0.000000e+00 : f32
    %27 = vector.broadcast %cst_17 : f32 to vector<8x128xf32>
    %28 = arith.subf %27, %23 : vector<8x128xf32>
    %29 = math.exp %28 : vector<8x128xf32>
    %30 = arith.mulf %26, %29 : vector<8x128xf32>
    %c0_18 = arith.constant 0 : index
    %c0_19 = arith.constant 0 : index
    %31 = vector.load %arg8[%c0_18, %c0_19] : memref<9x128xf32, #tpu.memory_space<vmem>>, vector<8x128xf32>
    tpu.vector_store %arg8[%c0_18, %c0_19], %30 {strides = array<i32>} : memref<9x128xf32, #tpu.memory_space<vmem>>, vector<8x128xf32>,
    %32 = vector.extract_strided_slice %21 {offsets = [16, 0], sizes = [1, 128], strides = [1, 1]} : vector<17x128xf32> to vector<1x128xf32>
    %c8 = arith.constant 8 : index
    %c0_20 = arith.constant 0 : index
    %33 = vector.load %arg8[%c8, %c0_20] : memref<9x128xf32, #tpu.memory_space<vmem>>, vector<1x128xf32>
    tpu.vector_store %arg8[%c8, %c0_20], %32 {strides = array<i32>} : memref<9x128xf32, #tpu.memory_space<vmem>>, vector<1x128xf32>,
    return
  }
  func.func @transform_0(%arg0: i32) -> (i32, i32) {
    %c0_i32 = arith.constant 0 : i32
    %c0_i32_0 = arith.constant 0 : i32
    return %c0_i32, %arg0 : i32, i32
  }
  func.func @transform_1(%arg0: i32) -> (i32, i32) {
    %c0_i32 = arith.constant 0 : i32
    %c0_i32_0 = arith.constant 0 : i32
    %c0_i32_1 = arith.constant 0 : i32
    return %c0_i32, %c0_i32_0 : i32, i32
  }
  func.func @transform_2(%arg0: i32) -> (i32, i32) {
    %c0_i32 = arith.constant 0 : i32
    %c0_i32_0 = arith.constant 0 : i32
    %c0_i32_1 = arith.constant 0 : i32
    return %c0_i32, %c0_i32_0 : i32, i32
  }
  func.func @transform_3(%arg0: i32) -> (i32, i32) {
    %c0_i32 = arith.constant 0 : i32
    %c0_i32_0 = arith.constant 0 : i32
    %c0_i32_1 = arith.constant 0 : i32
    return %c0_i32, %c0_i32_0 : i32, i32
  }
  func.func @transform_4(%arg0: i32) -> (i32, i32) {
    %c0_i32 = arith.constant 0 : i32
    %c0_i32_0 = arith.constant 0 : i32
    %c0_i32_1 = arith.constant 0 : i32
    return %c0_i32, %c0_i32_0 : i32, i32
  }
  func.func @transform_5(%arg0: i32) -> (i32, i32) {
    %c0_i32 = arith.constant 0 : i32
    %c0_i32_0 = arith.constant 0 : i32
    %c0_i32_1 = arith.constant 0 : i32
    return %c0_i32, %c0_i32_0 : i32, i32
  }
  func.func @transform_6(%arg0: i32) -> (i32, i32) {
    %c0_i32 = arith.constant 0 : i32
    %c0_i32_0 = arith.constant 0 : i32
    %c0_i32_1 = arith.constant 0 : i32
    return %c0_i32, %c0_i32_0 : i32, i32
  }
  func.func @transform_7(%arg0: i32) -> (i32, i32) {
    %c0_i32 = arith.constant 0 : i32
    %c0_i32_0 = arith.constant 0 : i32
    return %c0_i32, %arg0 : i32, i32
  }
}

</mosaic_0001>

<bundles_post_ra>
// kernel: tpu_custom_call.1
= control target key start
LH: loop header
LB: loop body
LE: loop exit
PB: predicated region body
PF: predicated region fallthrough
CT: control target
= control target key end

     0   :  { %6 = vsyncpa [#allocation3], 0  ;;  %s124_s0 = inlined_call_operand.hbm [shape: f32[8,128], index: 0, kind: input, shape index: {}]   ;;  %s125_s1 = inlined_call_operand.hbm [shape: f32[8,128], index: 1, kind: output, shape index: {}]  }
   0x1   :  { %7 = vsyncpa [#allocation4], 0  ;;  %s88_s6 = smov [#allocation2]   ;;  %s40_s10 = scalar_lea.hbm %s124_s0, 128 }
   0x2   :  { %s14_s7 = sshll.u32 %s88_s6, 4  ;;  %p41_p0 = scmp.ne.s32.totalorder %s124_s0, %s40_s10  ;;  %s15_s7 = int_to_ptr.vmem [resolvable:$true] %s14_s7 }
   0x3   :  { %p44_p1 = scmp.lt.u32.totalorder %s40_s10, %s124_s0 }
   0x5   :  { %p46_p2 = pnand %p44_p1, %p41_p0 }
   0x7   :  { %49 = shalt.err (!%p46_p2)
}
   0x8   :  { %s50_s15 = scalar_lea.vmem %s15_s7, 128  ;;  %p55_p4 = scmp.lt.s32.totalorder %s15_s7, %s15_s7 }
   0x9   :  { %p51_p3 = scmp.ne.s32.totalorder %s15_s7, %s50_s15  ;;  %p56_p5 = scmp.lt.s32.totalorder %s50_s15, %s50_s15 }
   0xb   :  { %p57_p6 = por %p56_p5, %p55_p4 }
   0xd   :  { %p58_p7 = pnand %p57_p6, %p51_p3 }
   0xf   :  { %61 = shalt.err (!%p58_p7)
}
  0x10   :  { %17 = dma.hbm_to_vmem [thread:$0]  %s124_s0, 128, %s15_s7, [#allocation3]  }
  0x11   :  { %84 = dma.done.wait [#allocation3], 128  }
  0x12   :  { %85 = vsyncadd [#allocation3], 4294967168  ;;  %s89_s18 = smov [#allocation5]   ;;  %v21_v0 = vld [vmem:[#allocation2] sm:$0xff] }
  0x13   :  { %s29_s19 = sshll.u32 %s89_s18, 4  ;;  %22 = vst [vmem:[#allocation5] sm:$0xff] %v21_v0  ;;  %s30_s19 = int_to_ptr.vmem [resolvable:$true] %s29_s19 }
  0x14   :  { %s62_s20 = scalar_lea.vmem %s30_s19, 128  ;;  %p67_p9 = scmp.lt.s32.totalorder %s30_s19, %s30_s19 }
  0x15   :  { %p63_p8 = scmp.ne.s32.totalorder %s30_s19, %s62_s20  ;;  %p68_p10 = scmp.lt.s32.totalorder %s62_s20, %s62_s20 }
  0x17   :  { %p69_p11 = por %p68_p10, %p67_p9 }
  0x19   :  { %p70_p12 = pnand %p69_p11, %p63_p8 }
  0x1b   :  { %73 = shalt.err (!%p70_p12)
}
  0x1c   :  { %s74_s23 = scalar_lea.hbm %s125_s1, 128 }
  0x1d   :  { %p75_p13 = scmp.ne.s32.totalorder %s125_s1, %s74_s23  ;;  %p78_p0 = scmp.lt.u32.totalorder %s74_s23, %s125_s1 }
  0x1f   :  { %p80_p1 = pnand %p78_p0, %p75_p13 }
  0x21   :  { %83 = shalt.err (!%p80_p1)
}
  0x22   :  { %32 = dma.vmem_to_hbm [thread:$0]  %s30_s19, 128, %s125_s1, [#allocation4]  }
  0x23   :  { %86 = dma.done.wait [#allocation4], 128  }
  0x24   :  { %87 = vsyncadd [#allocation4], 4294967168 }
  0x25   :  { %36 = vsyncpa [#allocation3], 1 }
  0x26   :  { %37 = vsyncpa [#allocation4], 1 }

// kernel: tpu_custom_call.1
= control target key start
LH: loop header
LB: loop body
LE: loop exit
PB: predicated region body
PF: predicated region fallthrough
CT: control target
= control target key end

     0   :  { %vm80_vm0 = vcmask 1045504   ;;  %vm73_vm1 = vcmask 97280   ;;  %v432_v7 = vmov 0   ;;  %s553_s0 = inlined_call_operand.vmem [shape: bf16[12,128], index: 0, kind: input, shape index: {}]   ;;  %s554_s1 = inlined_call_operand.vmem [shape: bf16[32,12], index: 1, kind: input, shape index: {}]   ;;  %s555_s2 = inlined_call_operand.vmem [shape: f32[32,1], index: 2, kind: input, shape index: {}]   ;;  %s556_s3 = inlined_call_operand.vmem [shape: bf16[32,32], index: 3, kind: input, shape index: {}]   ;;  %s557_s4 = inlined_call_operand.vmem [shape: f32[32,1], index: 4, kind: input, shape index: {}]   ;;  %s558_s5 = inlined_call_operand.vmem [shape: bf16[17,32], index: 5, kind: input, shape index: {}]   ;;  %s559_s6 = inlined_call_operand.vmem [shape: f32[17,1], index: 6, kind: input, shape index: {}]   ;;  %s560_s7 = inlined_call_operand.hbm [shape: f32[9,128], index: 7, kind: output, shape index: {}]  }
   0x1   :  { %v479_v0 = vld [vmem:[%s553_s0] sm:$0xf]  ;;  %v29_v1 = vld [vmem:[%s553_s0 + $0x4] sm:$0x3]  ;;  %v401_v6 = vld [vmem:[%s554_s1 + $0x8] sm:$0xff]   ;;  %397 = vset.pattern.permute.xlu0 %v432_v7  ;;  %398 = vset.pattern.permute.xlu1 %v432_v7 }
   0x2   :  { %v400_v2 = vld [vmem:[%s554_s1] sm:$0xff]   ;;  %v348_v3 = vcombine.low %v479_v0, %v29_v1  ;;  %v36_v8 = vld [vmem:[%s555_s2 + $0x10] sm:$0xff]  ;;  %v35_v9 = vld [vmem:[%s555_s2 + $0x8] sm:$0xff] }
   0x3   :  { %372 = vmatprep.mubr.msk.bf16.mxu0 %vm73_vm1, %v400_v2  ;;  %v34_v4 = vld [vmem:[%s555_s2] sm:$0xff]  ;;  %50 = vperm.xlu1 %398, %v36_v8   ;;  %v37_v10 = vld [vmem:[%s555_s2 + $0x18] sm:$0xff] }
   0x4   :  { %392 = vmatprep.subr.msk.bf16.mxu0 %vm80_vm0, %v348_v3  ;;  %v82_v5 = vsel %vm80_vm0, %v348_v3, 0  ;;  %40 = vperm.xlu0 %397, %v34_v4  }
   0x5   :  { %371 = vmatpush3.bf16.msra.mxu0 %v82_v5 }
   0x8   :  { %373 = vmatmul.mubr.msk.bf16.vlgmr.msra.gmra.mrb[0].mxu0 %vm73_vm1, %v401_v6  ;;  %45 = vperm.xlu0 %397, %v35_v9  }
   0x9   :  { %12 = vsyncpa [#allocation3], 0  ;;  %v143_v11 = vld [vmem:[%s557_s4] sm:$0xff]  ;;  %55 = vperm.xlu1 %398, %v37_v10   ;;  %v144_v12 = vld [vmem:[%s557_s4 + $0x8] sm:$0xff]  ;;  %vm177_vm2 = vcmask 261120   ;;  %v322_v59 = vunpack.c.l.bf16 %v479_v0 }
   0xa   :  { %v145_v13 = vld [vmem:[%s557_s4 + $0x10] sm:$0xff]  ;;  %v146_v14 = vld [vmem:[%s557_s4 + $0x18] sm:$0xff]  ;;  %v243_v15 = vld [vmem:[%s559_s6 + $0x8] sm:$0xff] }
   0xb   :  { %v242_v16 = vld [vmem:[%s559_s6] sm:$0xff]  ;;  %v244_v17 = vld [vmem:[%s559_s6 + $0x10] sm:$0x1]  ;;  %v403_v37 = vld [vmem:[%s556_s3 + $0x8] sm:$0xff]  }
   0xc   :  { %149 = vperm.xlu0 %397, %v143_v11   ;;  %v402_v18 = vld [vmem:[%s556_s3] sm:$0xff]   ;;  %v405_v57 = vld [vmem:[%s558_s5 + $0x8] ss:$0 sps:$4 sm:$0x11]  }
   0xd   :  { %154 = vperm.xlu1 %398, %v144_v12   ;;  %380 = vmatprep.mubr.msk.bf16.mxu1 %vm177_vm2, %v402_v18  ;;  %v404_v38 = vld [vmem:[%s558_s5] sm:$0xff]   ;;  %s433_s5 = smov [#allocation2]  }
   0xe   :  { %388 = vmatprep.mubr.msk.bf16.mxu0 %vm177_vm2, %v404_v38  ;;  %s335_s10 = sshll.u32 %s433_s5, 4  ;;  %s336_s10 = int_to_ptr.vmem [resolvable:$true] %s335_s10 }
   0xf   :  { %s408_s0 = scalar_lea.vmem %s336_s10, 256  ;;  %p413_p1 = scmp.lt.s32.totalorder %s336_s10, %s336_s10 }
  0x10   :  { %159 = vperm.xlu0 %397, %v145_v13   ;;  %p409_p0 = scmp.ne.s32.totalorder %s336_s10, %s408_s0  ;;  %p414_p2 = scmp.lt.s32.totalorder %s408_s0, %s408_s0 }
  0x11   :  { %164 = vperm.xlu1 %398, %v146_v14  }
  0x12   :  { %p415_p3 = por %p414_p2, %p413_p1 }
  0x14   :  { %252 = vperm.xlu0 %397, %v243_v15   ;;  %p416_p4 = pnand %p415_p3, %p409_p0 }
  0x15   :  { %247 = vperm.xlu1 %398, %v242_v16  }
  0x18   :  { %257 = vperm.xlu0 %397, %v244_v17  }
  0x82   :  { %v51_v19 = vpop.permute.xlu1 %50 }
  0x83   :  { %v41_v20 = vpop.permute.xlu0 %40 }
  0x87   :  { %v46_v27 = vpop.permute.xlu0 %45 }
  0x88   :  { %v56_v24 = vpop.permute.xlu1 %55 }
  0x8b   :  { %v150_v39 = vpop.permute.xlu0 %149 }
  0x8c   :  { %v155_v40 = vpop.permute.xlu1 %154 }
  0x8f   :  { %v160_v41 = vpop.permute.xlu0 %159 }
  0x90   :  { %v165_v45 = vpop.permute.xlu1 %164 }
  0x93   :  { %v253_v58 = vpop.permute.xlu0 %252 }
  0x94   :  { %v248_v62 = vpop.permute.xlu1 %247 }
  0x97   :  { %v258_v60 = vpop.permute.xlu0 %257 }
  0xdb   :  { %v374_v21 = vpop.f32.mrb[0].mxu0 }
  0xdc   :  { %v127_v22 = vadd.f32 %v374_v21, %v51_v19  ;;  %v118_v23 = vpop.f32.mrb[1].mxu0 }
  0xdd   :  { %v119_v25 = vadd.f32 %v118_v23, %v41_v20  ;;  %v375_v26 = vpop.f32.mrb[2].mxu0 }
  0xde   :  { %v130_v28 = vadd.f32 %v375_v26, %v56_v24  ;;  %v121_v29 = vpop.f32.mrb[3].mxu0  ;;  %v135_v31 = vmax.f32 %v127_v22, 0.0 }
  0xdf   :  { %v122_v30 = vadd.f32 %v121_v29, %v46_v27  ;;  %v133_v33 = vmax.f32 %v119_v25, 0.0 }
  0xe0   :  { %v136_v32 = vmax.f32 %v130_v28, 0.0 }
  0xe1   :  { %v134_v34 = vmax.f32 %v122_v30, 0.0 }
  0xe2   :  { %v138_v35 = vpack.c.bf16 %v136_v32, %v135_v31 }
  0xe3   :  { %v137_v36 = vpack.c.bf16 %v134_v34, %v133_v33 }
  0xe5   :  { %376 = vmatprep.subr.bf16.mxu1 %v137_v36 }
  0xe6   :  { %377 = vmatpush3.bf16.msra.mxu1 %v137_v36 }
  0xe7   :  { %378 = vmatprep.subr.bf16.mxu1 %v138_v35 }
  0xea   :  { %379 = vmatpush3.bf16.msra.mxu1 %v138_v35 }
  0xed   :  { %381 = vmatmul.mubr.msk.bf16.vlgmr.msra.gmra.mrb[0].mxu1 %vm177_vm2, %v403_v37 }
 0x1c0   :  { %v382_v42 = vpop.f32.mrb[0].mxu1 }
 0x1c1   :  { %v227_v43 = vadd.f32 %v382_v42, %v160_v41  ;;  %v218_v44 = vpop.f32.mrb[1].mxu1 }
 0x1c2   :  { %v219_v46 = vadd.f32 %v218_v44, %v150_v39  ;;  %v383_v47 = vpop.f32.mrb[2].mxu1 }
 0x1c3   :  { %v230_v48 = vadd.f32 %v383_v47, %v165_v45  ;;  %v221_v49 = vpop.f32.mrb[3].mxu1  ;;  %v235_v51 = vmax.f32 %v227_v43, 0.0 }
 0x1c4   :  { %v222_v50 = vadd.f32 %v221_v49, %v155_v40  ;;  %v233_v53 = vmax.f32 %v219_v46, 0.0 }
 0x1c5   :  { %v236_v52 = vmax.f32 %v230_v48, 0.0 }
 0x1c6   :  { %v234_v54 = vmax.f32 %v222_v50, 0.0 }
 0x1c7   :  { %v238_v55 = vpack.c.bf16 %v236_v52, %v235_v51 }
 0x1c8   :  { %v237_v56 = vpack.c.bf16 %v234_v54, %v233_v53 }
 0x1ca   :  { %384 = vmatprep.subr.bf16.mxu0 %v237_v56 }
 0x1cb   :  { %385 = vmatpush3.bf16.msra.mxu0 %v237_v56 }
 0x1cc   :  { %386 = vmatprep.subr.bf16.mxu0 %v238_v55 }
 0x1cf   :  { %387 = vmatpush3.bf16.msra.mxu0 %v238_v55 }
 0x1d2   :  { %389 = vmatmul.mubr.msk.bf16.vlgmr.msra.gmra.mrb[4].mxu0 %vm177_vm2, %v405_v57 }
 0x2a5   :  { %v390_v61 = vpop.f32.mrb[4].mxu0 }
 0x2a6   :  { %v317_v63 = vadd.f32 %v390_v61, %v258_v60  ;;  %v308_v1 = vpop.f32.mrb[5].mxu0 }
 0x2a7   :  { %v309_v2 = vadd.f32 %v308_v1, %v248_v62  ;;  %v391_v3 = vpop.f32.mrb[6].mxu0 }
 0x2a8   :  { %329 = vst [vmem:[#allocation2 + $0x8] sm:$0x1] %v317_v63  ;;  %v311_v4 = vpop.f32.mrb[7].mxu0 }
 0x2a9   :  { %v323_v5 = vsub.f32 %v322_v59, %v309_v2  ;;  %v312_v6 = vadd.f32 %v311_v4, %v253_v58 }
 0x2ab   :  { %v324_v7 = vsub.f32 0.0, %v312_v6 }
 0x2ad   :  { %v325_v8 = vmul.f32 1.442695, %v324_v7 }
 0x2af   :  { %406 = vpow2.f32 %v325_v8 }
 0x2b9   :  { %v407_v9 = vpop.eup %406 }
 0x2ba   :  { %v327_v10 = vmul.f32 %v407_v9, %v323_v5 }
 0x2bc   :  { %328 = vst [vmem:[#allocation2] sm:$0xff] %v327_v10 }
 0x2bd   :  { %419 = shalt.err (!%p416_p4)
}
 0x2be   :  { %s420_s13 = scalar_lea.hbm %s560_s7, 256 }
 0x2bf   :  { %p421_p5 = scmp.ne.s32.totalorder %s560_s7, %s420_s13  ;;  %p424_p6 = scmp.lt.u32.totalorder %s420_s13, %s560_s7 }
 0x2c1   :  { %p426_p7 = pnand %p424_p6, %p421_p5 }
 0x2c3   :  { %429 = shalt.err (!%p426_p7)
}
 0x2c4   :  { %s434_s17 = smov 128   ;;  %s435_s18 = smov 8  }
 0x2c5   :  { %341 = dma.vmem_to_hbm [thread:$0]  %s336_s10, 256, %s560_s7, [#allocation3], %s434_s17, %s434_s17, %s435_s18  }
 0x2c6   :  { %430 = dma.done.wait [#allocation3], 256  }
 0x2c7   :  { %431 = vsyncadd [#allocation3], 4294967040 }
 0x2c8   :  { %345 = vsyncpa [#allocation3], 1 }

</bundles_post_ra>
